<compile_context>
chip_gen: v5e
topology: v5e:2x2
jax: 0.10.0
libtpu: 0.0.40
codegen_flags: <defaults>
</compile_context>

<pallas_src>
import functools
import math

import jax
import jax.numpy as jnp
from jax.experimental import pallas as pl
from jax.experimental.pallas import tpu as pltpu

LANE = 128
SUBLANE = 8


def _round_up(x, m):
    return (x + m - 1) // m * m


def _fused_mlp_kernel(x_ref, w_ref, b_ref, o_ref, *, n_total_layers, compute_dtype):
    """Entire Discriminator forward, activations resident in VMEM.

    x_ref: [TB, Fp]     f32   batch tile, zero-padded to Fp lanes
    w_ref: [L, Fp, Fp]  bf16  layer l weight, zero-padded (stored [Fin, Fout])
    b_ref: [L, Fp]      f32   layer l bias, zero-padded
    o_ref: [TB, Fp]     f32   lane-dense output slab (real cols sliced outside)
    """
    h = x_ref[...]  # f32
    for layer in range(n_total_layers):
        w = w_ref[layer]                 # [Fp, Fp] in compute dtype
        b = b_ref[pl.ds(layer, 1), :]    # [1, Fp] f32, one-time load per layer
        y = jnp.dot(h.astype(compute_dtype), w,
                    preferred_element_type=jnp.float32) + b
        if layer < n_total_layers - 1:
            h = jnp.maximum(y, 0.0)          # ReLU, f32 on the VPU
        else:
            h = 1.0 / (1.0 + jnp.exp(-y))    # Sigmoid, f32; exp goes to the EUP
    o_ref[...] = h.astype(o_ref.dtype)


def discriminator_forward(x, params, *, compute_dtype=jnp.bfloat16, batch_tile=128):
    """x: [B, in_features] f32. params: list of (W [Fin, Fout], b [Fout])."""
    B, in_features = x.shape
    L = len(params)
    out_features = params[-1][0].shape[1]

    # One uniform lane-dense padded width for every layer (>=128, multiple of 128).
    dims = [in_features] + [w.shape[1] for w, _ in params]
    Fp = _round_up(max(max(dims), LANE), LANE)

    # Batch padding / tiling.
    Bp8 = _round_up(B, SUBLANE)
    TB = batch_tile if Bp8 >= batch_tile else Bp8
    Bp = _round_up(Bp8, TB)

    # Pad + stack parameters once. Weights in bf16 (MXU operands), biases f32.
    w_stacked = jnp.stack([
        jnp.pad(w, ((0, Fp - w.shape[0]), (0, Fp - w.shape[1]))).astype(compute_dtype)
        for w, _ in params])
    b_stacked = jnp.stack([
        jnp.pad(b, (0, Fp - b.shape[0])).astype(jnp.float32)
        for _, b in params])

    x_p = jnp.pad(x.astype(jnp.float32), ((0, Bp - B), (0, Fp - in_features)))

    kernel = functools.partial(
        _fused_mlp_kernel, n_total_layers=L, compute_dtype=compute_dtype)

    out_p = pl.pallas_call(
        kernel,
        out_shape=jax.ShapeDtypeStruct((Bp, Fp), jnp.float32),
        grid=(Bp // TB,),
        in_specs=[
            pl.BlockSpec((TB, Fp), lambda i: (i, 0)),
            pl.BlockSpec((L, Fp, Fp), lambda i: (0, 0, 0)),
            pl.BlockSpec((L, Fp), lambda i: (0, 0)),
        ],
        out_specs=pl.BlockSpec((TB, Fp), lambda i: (i, 0)),
        compiler_params=pltpu.CompilerParams(dimension_semantics=("parallel",)),
    )(x_p, w_stacked, b_stacked)

    return out_p[:B, :out_features]


def init_discriminator_params(key, in_features, out_features, n_layers):
    """Mirror PyTorch nn.Linear default init (uniform +-1/sqrt(fan_in)).

    Weights are stored transposed [Fin, Fout] so each layer is y = x @ W + b.
    Note: in_features must be a power of two to reproduce the PyTorch widths
    exactly (the original module truncates log2 otherwise).
    """
    exponent = int(math.log2(in_features))
    dims = []
    n_feat = in_features
    for i in range(n_layers):
        out_dim = 2 ** (exponent - i)
        dims.append((n_feat, out_dim))
        n_feat = out_dim
    dims.append((n_feat, out_features))

    params = []
    for fin, fout in dims:
        key, kw, kb = jax.random.split(key, 3)
        bound = 1.0 / math.sqrt(fin)
        w = jax.random.uniform(kw, (fin, fout), jnp.float32, -bound, bound)
        b = jax.random.uniform(kb, (fout,), jnp.float32, -bound, bound)
        params.append((w, b))
    return params


def discriminator_reference(x, params, compute_dtype=jnp.bfloat16):
    """Pure-JAX reference that mirrors the kernel math (bf16 MXU, f32 acc)."""
    h = x.astype(jnp.float32)
    L = len(params)
    for idx, (w, b) in enumerate(params):
        y = jnp.dot(h.astype(compute_dtype), w.astype(compute_dtype),
                    preferred_element_type=jnp.float32) + b[None, :]
        h = jnp.maximum(y, 0.0) if idx < L - 1 else 1.0 / (1.0 + jnp.exp(-y))
    return h


def discriminator_reference_f32(x, params):
    """Full-f32 reference matching the original PyTorch module semantics."""
    h = x
    L = len(params)
    for idx, (w, b) in enumerate(params):
        h = h @ w + b[None, :]
        h = jnp.maximum(h, 0.0) if idx < L - 1 else jax.nn.sigmoid(h)
    return h


if __name__ == "__main__":
    in_features = 32
    out_features = 1
    n_layers = 3
    batch = 8

    key = jax.random.PRNGKey(0)
    key_x, key_p = jax.random.split(key)
    x = jax.random.normal(key_x, (batch, in_features), jnp.float32)
    params = init_discriminator_params(key_p, in_features, out_features, n_layers)

    out = discriminator_forward(x, params)
    out = jax.block_until_ready(out)
    assert out.shape == (batch, out_features), out.shape

    # Exact check against a reference that mirrors the kernel's math.
    ref = discriminator_reference(x, params)
    assert jnp.allclose(out, ref, atol=1e-5, rtol=1e-5), (out, ref)

    # Looser semantic check against the full-f32 PyTorch-equivalent math
    # (bf16 MXU operands introduce ~1e-3-level differences in the logits).
    ref_f32 = discriminator_reference_f32(x, params)
    assert jnp.allclose(out, ref_f32, atol=5e-2, rtol=5e-2), (out, ref_f32)

    print("KERNEL_OK")
</pallas_src>

<mosaic_0001>
module attributes {stable_mosaic.version = 11 : i64} {
  func.func @_fused_mlp_kernel(%arg0: i32, %arg1: memref<8x128xf32, #tpu.memory_space<vmem>>, %arg2: memref<4x128x128xbf16, #tpu.memory_space<vmem>>, %arg3: memref<4x128xf32, #tpu.memory_space<vmem>>, %arg4: memref<8x128xf32, #tpu.memory_space<vmem>>) attributes {dimension_semantics = [#tpu.dimension_semantics<parallel>], iteration_bounds = array<i64: 1>, scalar_prefetch = 0 : i64, scratch_operands = 0 : i64, tpu.core_type = #tpu.core_type<tc>, window_params = [{transform_indices = @transform_0, window_bounds = array<i64: 8, 128>}, {pipeline_mode = #tpu.pipeline_mode<synchronous>, transform_indices = @transform_1, window_bounds = array<i64: 4, 128, 128>}, {pipeline_mode = #tpu.pipeline_mode<synchronous>, transform_indices = @transform_2, window_bounds = array<i64: 4, 128>}, {transform_indices = @transform_3, window_bounds = array<i64: 8, 128>}]} {
    %c0 = arith.constant 0 : index
    %c0_0 = arith.constant 0 : index
    %0 = vector.load %arg1[%c0, %c0_0] : memref<8x128xf32, #tpu.memory_space<vmem>>, vector<8x128xf32>
    %c0_1 = arith.constant 0 : index
    %c0_2 = arith.constant 0 : index
    %c0_3 = arith.constant 0 : index
    %1 = vector.load %arg2[%c0_1, %c0_2, %c0_3] : memref<4x128x128xbf16, #tpu.memory_space<vmem>>, vector<1x128x128xbf16>
    %2 = vector.shape_cast %1 : vector<1x128x128xbf16> to vector<128x128xbf16>
    %c0_4 = arith.constant 0 : index
    %c0_5 = arith.constant 0 : index
    %3 = vector.load %arg3[%c0_4, %c0_5] : memref<4x128xf32, #tpu.memory_space<vmem>>, vector<1x128xf32>
    %4 = arith.truncf %0 : vector<8x128xf32> to vector<8x128xbf16>
    %cst = arith.constant dense<0.000000e+00> : vector<8x128xf32>
    %5 = tpu.matmul %4, %2, %cst {dimension_numbers = #tpu.dot_dimension_numbers<[1], [0], [0], [1], [0, 0, 1, 1], [], []>} : vector<8x128xbf16>, vector<128x128xbf16>, vector<8x128xf32> -> vector<8x128xf32>
    %6 = vector.broadcast %3 : vector<1x128xf32> to vector<8x128xf32>
    %7 = arith.addf %5, %6 : vector<8x128xf32>
    %cst_6 = arith.constant 0.000000e+00 : f32
    %8 = vector.broadcast %cst_6 : f32 to vector<8x128xf32>
    %9 = arith.maximumf %7, %8 : vector<8x128xf32>
    %c1 = arith.constant 1 : index
    %c0_7 = arith.constant 0 : index
    %c0_8 = arith.constant 0 : index
    %10 = vector.load %arg2[%c1, %c0_7, %c0_8] : memref<4x128x128xbf16, #tpu.memory_space<vmem>>, vector<1x128x128xbf16>
    %11 = vector.shape_cast %10 : vector<1x128x128xbf16> to vector<128x128xbf16>
    %c1_9 = arith.constant 1 : index
    %c0_10 = arith.constant 0 : index
    %12 = vector.load %arg3[%c1_9, %c0_10] : memref<4x128xf32, #tpu.memory_space<vmem>>, vector<1x128xf32>
    %13 = arith.truncf %9 : vector<8x128xf32> to vector<8x128xbf16>
    %cst_11 = arith.constant dense<0.000000e+00> : vector<8x128xf32>
    %14 = tpu.matmul %13, %11, %cst_11 {dimension_numbers = #tpu.dot_dimension_numbers<[1], [0], [0], [1], [0, 0, 1, 1], [], []>} : vector<8x128xbf16>, vector<128x128xbf16>, vector<8x128xf32> -> vector<8x128xf32>
    %15 = vector.broadcast %12 : vector<1x128xf32> to vector<8x128xf32>
    %16 = arith.addf %14, %15 : vector<8x128xf32>
    %cst_12 = arith.constant 0.000000e+00 : f32
    %17 = vector.broadcast %cst_12 : f32 to vector<8x128xf32>
    %18 = arith.maximumf %16, %17 : vector<8x128xf32>
    %c2 = arith.constant 2 : index
    %c0_13 = arith.constant 0 : index
    %c0_14 = arith.constant 0 : index
    %19 = vector.load %arg2[%c2, %c0_13, %c0_14] : memref<4x128x128xbf16, #tpu.memory_space<vmem>>, vector<1x128x128xbf16>
    %20 = vector.shape_cast %19 : vector<1x128x128xbf16> to vector<128x128xbf16>
    %c2_15 = arith.constant 2 : index
    %c0_16 = arith.constant 0 : index
    %21 = vector.load %arg3[%c2_15, %c0_16] : memref<4x128xf32, #tpu.memory_space<vmem>>, vector<1x128xf32>
    %22 = arith.truncf %18 : vector<8x128xf32> to vector<8x128xbf16>
    %cst_17 = arith.constant dense<0.000000e+00> : vector<8x128xf32>
    %23 = tpu.matmul %22, %20, %cst_17 {dimension_numbers = #tpu.dot_dimension_numbers<[1], [0], [0], [1], [0, 0, 1, 1], [], []>} : vector<8x128xbf16>, vector<128x128xbf16>, vector<8x128xf32> -> vector<8x128xf32>
    %24 = vector.broadcast %21 : vector<1x128xf32> to vector<8x128xf32>
    %25 = arith.addf %23, %24 : vector<8x128xf32>
    %cst_18 = arith.constant 0.000000e+00 : f32
    %26 = vector.broadcast %cst_18 : f32 to vector<8x128xf32>
    %27 = arith.maximumf %25, %26 : vector<8x128xf32>
    %c3 = arith.constant 3 : index
    %c0_19 = arith.constant 0 : index
    %c0_20 = arith.constant 0 : index
    %28 = vector.load %arg2[%c3, %c0_19, %c0_20] : memref<4x128x128xbf16, #tpu.memory_space<vmem>>, vector<1x128x128xbf16>
    %29 = vector.shape_cast %28 : vector<1x128x128xbf16> to vector<128x128xbf16>
    %c3_21 = arith.constant 3 : index
    %c0_22 = arith.constant 0 : index
    %30 = vector.load %arg3[%c3_21, %c0_22] : memref<4x128xf32, #tpu.memory_space<vmem>>, vector<1x128xf32>
    %31 = arith.truncf %27 : vector<8x128xf32> to vector<8x128xbf16>
    %cst_23 = arith.constant dense<0.000000e+00> : vector<8x128xf32>
    %32 = tpu.matmul %31, %29, %cst_23 {dimension_numbers = #tpu.dot_dimension_numbers<[1], [0], [0], [1], [0, 0, 1, 1], [], []>} : vector<8x128xbf16>, vector<128x128xbf16>, vector<8x128xf32> -> vector<8x128xf32>
    %33 = vector.broadcast %30 : vector<1x128xf32> to vector<8x128xf32>
    %34 = arith.addf %32, %33 : vector<8x128xf32>
    %cst_24 = arith.constant 0.000000e+00 : f32
    %35 = vector.broadcast %cst_24 : f32 to vector<8x128xf32>
    %36 = arith.subf %35, %34 : vector<8x128xf32>
    %37 = math.exp %36 : vector<8x128xf32>
    %cst_25 = arith.constant 1.000000e+00 : f32
    %38 = vector.broadcast %cst_25 : f32 to vector<8x128xf32>
    %39 = arith.addf %38, %37 : vector<8x128xf32>
    %cst_26 = arith.constant 1.000000e+00 : f32
    %40 = vector.broadcast %cst_26 : f32 to vector<8x128xf32>
    %41 = arith.divf %40, %39 : vector<8x128xf32>
    %c0_27 = arith.constant 0 : index
    %c0_28 = arith.constant 0 : index
    %42 = vector.load %arg4[%c0_27, %c0_28] : memref<8x128xf32, #tpu.memory_space<vmem>>, vector<8x128xf32>
    tpu.vector_store %arg4[%c0_27, %c0_28], %41 {strides = array<i32>} : memref<8x128xf32, #tpu.memory_space<vmem>>, vector<8x128xf32>,
    return
  }
  func.func @transform_0(%arg0: i32) -> (i32, i32) {
    %c0_i32 = arith.constant 0 : i32
    %c0_i32_0 = arith.constant 0 : i32
    return %arg0, %c0_i32 : i32, i32
  }
  func.func @transform_1(%arg0: i32) -> (i32, i32, i32) {
    %c0_i32 = arith.constant 0 : i32
    %c0_i32_0 = arith.constant 0 : i32
    %c0_i32_1 = arith.constant 0 : i32
    %c0_i32_2 = arith.constant 0 : i32
    return %c0_i32, %c0_i32_0, %c0_i32_1 : i32, i32, i32
  }
  func.func @transform_2(%arg0: i32) -> (i32, i32) {
    %c0_i32 = arith.constant 0 : i32
    %c0_i32_0 = arith.constant 0 : i32
    %c0_i32_1 = arith.constant 0 : i32
    return %c0_i32, %c0_i32_0 : i32, i32
  }
  func.func @transform_3(%arg0: i32) -> (i32, i32) {
    %c0_i32 = arith.constant 0 : i32
    %c0_i32_0 = arith.constant 0 : i32
    return %arg0, %c0_i32 : i32, i32
  }
}

</mosaic_0001>

<bundles_post_ra>
// kernel: tpu_custom_call.1
= control target key start
LH: loop header
LB: loop body
LE: loop exit
PB: predicated region body
PF: predicated region fallthrough
CT: control target
= control target key end

     0   :  { %8 = vsyncpa [#allocation3], 0  ;;  %s737_s0 = inlined_call_operand.hbm [shape: f32[8,128], index: 0, kind: input, shape index: {}]   ;;  %s738_s1 = inlined_call_operand.hbm [shape: bf16[4,128,128], index: 1, kind: input, shape index: {}]   ;;  %s739_s2 = inlined_call_operand.hbm [shape: f32[4,128], index: 2, kind: input, shape index: {}]   ;;  %s740_s3 = inlined_call_operand.hbm [shape: f32[8,128], index: 3, kind: output, shape index: {}]  }
   0x1   :  { %9 = vsyncpa [#allocation6], 0  ;;  %s26_s14 = sshll.u32 %s738_s1, 4  ;;  %s27_s14 = int_to_ptr.hbm [resolvable:$true] %s26_s14 }
   0x2   :  { %10 = vsyncpa [#allocation4], 0  ;;  %s699_s15 = smov [#allocation5]   ;;  %s16_s19 = sshll.u32 %s737_s0, 4  ;;  %s17_s19 = int_to_ptr.hbm [resolvable:$true] %s16_s19 }
   0x3   :  { %s28_s16 = sshll.u32 %s699_s15, 4  ;;  %s700_s20 = smov 64   ;;  %s29_s16 = int_to_ptr.vmem [resolvable:$true] %s28_s16 }
   0x4   :  { %s701_s21 = smov 4   ;;  %s702_s22 = smov [#allocation2]  }
   0x5   :  { %34 = dma.hbm_to_vmem [thread:$0]  %s27_s14, 4096, %s29_s16, [#allocation6], %s700_s20, %s700_s20, %s701_s21  }
   0x6   :  { %s18_s23 = sshll.u32 %s702_s22, 4  ;;  %s40_s26 = sshll.u32 %s739_s2, 4  ;;  %s19_s23 = int_to_ptr.vmem [resolvable:$true] %s18_s23  ;;  %s41_s26 = int_to_ptr.hbm [resolvable:$true] %s40_s26 }
   0x7   :  { %21 = dma.hbm_to_vmem [thread:$0]  %s17_s19, 128, %s19_s23, [#allocation3]  }
   0x8   :  { %s703_s1 = smov [#allocation7]  }
   0x9   :  { %s42_s27 = sshll.u32 %s703_s1, 4  ;;  %s43_s27 = int_to_ptr.vmem [resolvable:$true] %s42_s27 }
   0xa   :  { %45 = dma.hbm_to_vmem [thread:$0]  %s41_s26, 64, %s43_s27, [#allocation6]  }
   0xb   :  { %693 = dma.done.wait [#allocation3], 128  }
   0xc   :  { %694 = vsyncadd [#allocation3], 4294967168 }
   0xd   :  { %695 = dma.done.wait [#allocation6], 4160  }
   0xe   :  { %696 = vsyncadd [#allocation6], 4294963136  ;;  %v558_v0 = vld [vmem:[#allocation5 + $0x38] sm:$0xff]  ;;  %v557_v1 = vld [vmem:[#allocation5 + $0x30] sm:$0xff]  ;;  %s704_s0 = smov [#allocation8]   ;;  %s412_s30 = sshll.u32 %s740_s3, 4  ;;  %s413_s30 = int_to_ptr.hbm [resolvable:$true] %s412_s30 }
   0xf   :  { %126 = vmatpush.bf16.msra.mxu0 %v558_v0  ;;  %v566_v2 = vld [vmem:[#allocation5 + $0x78] sm:$0xff]  ;;  %v565_v3 = vld [vmem:[#allocation5 + $0x70] sm:$0xff]  ;;  %v556_v4 = vld [vmem:[#allocation5 + $0x28] sm:$0xff]  ;;  %s410_s2 = sshll.u32 %s704_s0, 4  ;;  %s411_s2 = int_to_ptr.vmem [resolvable:$true] %s410_s2 }
  0x10   :  { %208 = vmatpush.bf16.msra.mxu1 %v566_v2  ;;  %v564_v5 = vld [vmem:[#allocation5 + $0x68] sm:$0xff]  ;;  %v555_v6 = vld [vmem:[#allocation5 + $0x20] sm:$0xff]  ;;  %v554_v8 = vld [vmem:[#allocation5 + $0x18] sm:$0xff] }
  0x11   :  { %v563_v7 = vld [vmem:[#allocation5 + $0x60] sm:$0xff]  ;;  %v562_v9 = vld [vmem:[#allocation5 + $0x58] sm:$0xff]  ;;  %v553_v10 = vld [vmem:[#allocation5 + $0x10] sm:$0xff] }
  0x12   :  { %v561_v11 = vld [vmem:[#allocation5 + $0x50] sm:$0xff]  ;;  %v552_v12 = vld [vmem:[#allocation5 + $0x8] sm:$0xff]  ;;  %v551_v13 = vld [vmem:[#allocation5] sm:$0xff] }
  0x13   :  { %127 = vmatpush.bf16.msra.mxu0 %v557_v1  ;;  %v58_v14 = vld [vmem:[#allocation2] sm:$0xff]  ;;  %v560_v16 = vld [vmem:[#allocation5 + $0x48] sm:$0xff]  ;;  %v559_v17 = vld [vmem:[#allocation5 + $0x40] sm:$0xff] }
  0x14   :  { %209 = vmatpush.bf16.msra.mxu1 %v565_v3  ;;  %v76_v15 = vpack.c.bf16 %v58_v14, %v58_v14  ;;  %v574_v18 = vld [vmem:[#allocation5 + $0xb8] sm:$0xff]  ;;  %v573_v19 = vld [vmem:[#allocation5 + $0xb0] sm:$0xff]  ;;  %v572_v20 = vld [vmem:[#allocation5 + $0xa8] sm:$0xff] }
  0x15   :  { %290 = vmatpush.bf16.msra.mxu2 %v574_v18  ;;  %v571_v21 = vld [vmem:[#allocation5 + $0xa0] sm:$0xff]  ;;  %v570_v22 = vld [vmem:[#allocation5 + $0x98] sm:$0xff]  ;;  %v569_v23 = vld [vmem:[#allocation5 + $0x90] sm:$0xff] }
  0x16   :  { %v589_v24 = vld [vmem:[#allocation7] ss:$0 sm:$0xff]  ;;  %v568_v30 = vld [vmem:[#allocation5 + $0x88] sm:$0xff]  ;;  %v582_v32 = vld [vmem:[#allocation5 + $0xf8] sm:$0xff] }
  0x17   :  { %128 = vmatpush.bf16.msra.mxu0 %v556_v4  ;;  %v567_v31 = vld [vmem:[#allocation5 + $0x80] sm:$0xff]  ;;  %372 = vmatpush.bf16.msra.mxu3 %v582_v32  ;;  %v581_v33 = vld [vmem:[#allocation5 + $0xf0] sm:$0xff]  ;;  %v580_v34 = vld [vmem:[#allocation5 + $0xe8] sm:$0xff] }
  0x18   :  { %210 = vmatpush.bf16.msra.mxu1 %v564_v5  ;;  %v579_v35 = vld [vmem:[#allocation5 + $0xe0] sm:$0xff]  ;;  %v578_v36 = vld [vmem:[#allocation5 + $0xd8] sm:$0xff]  ;;  %v577_v37 = vld [vmem:[#allocation5 + $0xd0] sm:$0xff] }
  0x19   :  { %291 = vmatpush.bf16.msra.mxu2 %v573_v19  ;;  %v590_v38 = vld [vmem:[#allocation7 + $0x1] ss:$0 sm:$0xff]  ;;  %v576_v44 = vld [vmem:[#allocation5 + $0xc8] sm:$0xff]  ;;  %v591_v46 = vld [vmem:[#allocation7 + $0x2] ss:$0 sm:$0xff] }
  0x1a   :  { %v575_v45 = vld [vmem:[#allocation5 + $0xc0] sm:$0xff] }
  0x1b   :  { %129 = vmatpush.bf16.msra.mxu0 %v555_v6  ;;  %373 = vmatpush.bf16.msra.mxu3 %v581_v33  ;;  %v592_v52 = vld [vmem:[#allocation7 + $0x3] ss:$0 sm:$0xff] }
  0x1c   :  { %211 = vmatpush.bf16.msra.mxu1 %v563_v7 }
  0x1d   :  { %292 = vmatpush.bf16.msra.mxu2 %v572_v20 }
  0x1f   :  { %130 = vmatpush.bf16.msra.mxu0 %v554_v8  ;;  %374 = vmatpush.bf16.msra.mxu3 %v580_v34 }
  0x20   :  { %212 = vmatpush.bf16.msra.mxu1 %v562_v9 }
  0x21   :  { %293 = vmatpush.bf16.msra.mxu2 %v571_v21 }
  0x23   :  { %131 = vmatpush.bf16.msra.mxu0 %v553_v10  ;;  %375 = vmatpush.bf16.msra.mxu3 %v579_v35 }
  0x24   :  { %213 = vmatpush.bf16.msra.mxu1 %v561_v11 }
  0x25   :  { %294 = vmatpush.bf16.msra.mxu2 %v570_v22 }
  0x27   :  { %132 = vmatpush.bf16.msra.mxu0 %v552_v12  ;;  %376 = vmatpush.bf16.msra.mxu3 %v578_v36 }
  0x28   :  { %214 = vmatpush.bf16.msra.mxu1 %v560_v16 }
  0x29   :  { %295 = vmatpush.bf16.msra.mxu2 %v569_v23 }
  0x2b   :  { %133 = vmatpush.bf16.msra.mxu0 %v551_v13  ;;  %377 = vmatpush.bf16.msra.mxu3 %v577_v37 }
  0x2c   :  { %215 = vmatpush.bf16.msra.mxu1 %v559_v17 }
  0x2d   :  { %296 = vmatpush.bf16.msra.mxu2 %v568_v30 }
  0x2e   :  { %134 = vmatmul.bf16.vlgmr.msra.gmra.mxu0 %v76_v15 }
  0x2f   :  { %378 = vmatpush.bf16.msra.mxu3 %v576_v44 }
  0x31   :  { %297 = vmatpush.bf16.msra.mxu2 %v567_v31 }
  0x33   :  { %379 = vmatpush.bf16.msra.mxu3 %v575_v45 }
  0xab   :  { %v135_v25 = vpop.f32.mrf.mxu0 }
  0xac   :  { %v136_v26 = vadd.f32 %v589_v24, %v135_v25 }
  0xae   :  { %v139_v27 = vmax.f32 %v136_v26, 0.0 }
  0xb0   :  { %v158_v28 = vpack.c.bf16 %v139_v27, %v139_v27 }
  0xb2   :  { %216 = vmatmul.bf16.vlgmr.msra.gmra.mxu1 %v158_v28 }
  0xb3   :  { %v137_v29 = vpop.f32.mrf.mxu0 }
 0x12f   :  { %v217_v39 = vpop.f32.mrf.mxu1 }
 0x130   :  { %v218_v40 = vadd.f32 %v590_v38, %v217_v39 }
 0x132   :  { %v221_v41 = vmax.f32 %v218_v40, 0.0 }
 0x134   :  { %v240_v42 = vpack.c.bf16 %v221_v41, %v221_v41 }
 0x136   :  { %298 = vmatmul.bf16.vlgmr.msra.gmra.mxu2 %v240_v42 }
 0x137   :  { %v219_v43 = vpop.f32.mrf.mxu1 }
 0x1b9   :  { %v299_v47 = vpop.f32.mrf.mxu2 }
 0x1ba   :  { %v300_v48 = vadd.f32 %v591_v46, %v299_v47 }
 0x1bc   :  { %v303_v49 = vmax.f32 %v300_v48, 0.0 }
 0x1be   :  { %v322_v50 = vpack.c.bf16 %v303_v49, %v303_v49 }
 0x1c0   :  { %380 = vmatmul.bf16.vlgmr.msra.gmra.mxu3 %v322_v50 }
 0x1c1   :  { %v301_v51 = vpop.f32.mrf.mxu2 }
 0x243   :  { %v381_v53 = vpop.f32.mrf.mxu3 }
 0x244   :  { %v382_v54 = vadd.f32 %v592_v52, %v381_v53 }
 0x246   :  { %v385_v55 = vsub.f32 0.0, %v382_v54 }
 0x248   :  { %v386_v56 = vmul.f32 1.442695, %v385_v55 }
 0x24a   :  { %593 = vpow2.f32 %v386_v56 }
 0x24b   :  { %v383_v57 = vpop.f32.mrf.mxu3 }
 0x250   :  { %v594_v58 = vpop.eup %593 }
 0x251   :  { %v388_v59 = vadd.f32 1.0, %v594_v58 }
 0x253   :  { %595 = vrcp.f32 %v388_v59  ;;  %v400_v63 = vand.u32 2147483648, %v388_v59  ;;  %v398_v1 = vand.u32 2147483647, %v388_v59  ;;  %vm394_vm1 = vweird.f32 %v388_v59 }
 0x255   :  { %v401_v3 = vor.u32 1.1754944e-38, %v400_v63  ;;  %vm399_vm3 = vcmp.eq.f32.partialorder %v398_v1, 8.507059e+37 }
 0x259   :  { %v596_v60 = vpop.eup %595 }
 0x25a   :  { %v390_v61 = vmul.f32 %v596_v60, %v388_v59  ;;  %vm395_vm0 = vweird.f32 %v596_v60 }
 0x25b   :  { %vm396_vm2 = vmor %vm394_vm1, %vm395_vm0 }
 0x25c   :  { %v391_v62 = vsub.f32 1.0, %v390_v61 }
 0x25e   :  { %v392_v0 = vmul.f32 %v596_v60, %v391_v62 }
 0x260   :  { %v393_v2 = vadd.f32 %v596_v60, %v392_v0 }
 0x262   :  { %v397_v4 = vsel %vm396_vm2, %v596_v60, %v393_v2 }
 0x263   :  { %v402_v5 = vsel %vm399_vm3, %v401_v3, %v397_v4 }
 0x264   :  { %404 = vst [vmem:[#allocation8] sm:$0xff] %v402_v5 }
 0x265   :  { %415 = dma.vmem_to_hbm [thread:$0]  %s411_s2, 128, %s413_s30, [#allocation4]  }
 0x266   :  { %697 = dma.done.wait [#allocation4], 128  }
 0x267   :  { %698 = vsyncadd [#allocation4], 4294967168 }
 0x268   :  { %420 = vsyncpa [#allocation3], 1 }
 0x269   :  { %421 = vsyncpa [#allocation6], 1 }
 0x26a   :  { %422 = vsyncpa [#allocation4], 1 }

</bundles_post_ra>
